<compile_context>
chip_gen: v5e
topology: v5e:2x2
jax: 0.10.0
libtpu: 0.0.40
codegen_flags: <defaults>
</compile_context>

<pallas_src>
import functools
import numpy as np

import jax
import jax.numpy as jnp
from jax.experimental import pallas as pl
from jax.experimental.pallas import tpu as pltpu


# ----------------------------------------------------------------------------
# Shape / chip helpers
# ----------------------------------------------------------------------------
def _rup(x, m):
    return ((x + m - 1) // m) * m


_TPU_VMEM_BYTES = None


def _tpu_vmem_bytes():
    """Physical VMEM per core (128 MiB on v5e/v6e, 64 MiB on v7x)."""
    global _TPU_VMEM_BYTES
    if _TPU_VMEM_BYTES is None:
        cap = 128 * 1024 * 1024
        try:
            info_fn = getattr(pltpu, "get_tpu_info", None)
            if info_fn is not None:
                cap = int(getattr(info_fn(), "vmem_capacity_bytes", cap))
        except Exception:
            pass
        _TPU_VMEM_BYTES = cap
    return _TPU_VMEM_BYTES


def _vmem_limit_bytes():
    # ~96 MiB on 128-MiB chips (v5e/v6e), ~48 MiB on v7x (64 MiB physical).
    return int(min(_tpu_vmem_bytes() * 3 // 4, 100 * 1024 * 1024))


def _tile_cap():
    # Bigger A tiles on chips with 128 MiB VMEM; keep 512 on v7x.
    return 512 if _tpu_vmem_bytes() <= 64 * 1024 * 1024 else 1024


def _pad_rows(n):
    """Pad node count: multiple of 128 (lane-dense A), multiple of 256 above 256
    so the row axis can always be split into >=2 lane-aligned tiles (megacore)."""
    n_pad = _rup(max(int(n), 1), 128)
    if n_pad > 256:
        n_pad = _rup(n_pad, 256)
    return n_pad


def _row_tile(n_pad):
    cap = _tile_cap()
    if n_pad <= 256:
        return n_pad
    t = min(cap, n_pad // 2)        # >= 2 row tiles -> both TensorCores busy
    while n_pad % t:
        t -= 128
    return t


def _k_tile(n_pad):
    cap = _tile_cap()
    t = min(cap, n_pad)
    while n_pad % t:
        t -= 128
    return t


def _col_tile(out_pad):
    if out_pad <= 512:
        return out_pad
    t = 512
    while out_pad % t:
        t -= 128
    return t


def _pad2(a, rows, cols, dtype):
    a = jnp.asarray(a)
    a = jnp.pad(a, ((0, rows - a.shape[0]), (0, cols - a.shape[1])))
    return a.astype(dtype)


def _cparams(dimension_semantics):
    return pltpu.CompilerParams(dimension_semantics=dimension_semantics,
                                vmem_limit_bytes=_vmem_limit_bytes())


# ----------------------------------------------------------------------------
# Kernel 1: row-tiled "linear pair"  ->  XWn = X@W_neigh (bf16),  XWs = X@W_self + b (f32)
# ----------------------------------------------------------------------------
def _linear_pair_kernel(x_ref, wn_ref, ws_ref, b_ref, xwn_ref, xws_ref):
    x = x_ref[...]
    xwn_ref[...] = jnp.dot(x, wn_ref[...],
                           preferred_element_type=jnp.float32).astype(xwn_ref.dtype)
    xws_ref[...] = (jnp.dot(x, ws_ref[...], preferred_element_type=jnp.float32)
                    + b_ref[...]).astype(xws_ref.dtype)


def linear_pair(x, w_neigh, w_self, bias):
    n_pad, f_pad = x.shape
    h_pad = w_neigh.shape[1]
    rt = _row_tile(n_pad)
    return pl.pallas_call(
        _linear_pair_kernel,
        out_shape=(jax.ShapeDtypeStruct((n_pad, h_pad), jnp.bfloat16),
                   jax.ShapeDtypeStruct((n_pad, h_pad), jnp.float32)),
        grid_spec=pltpu.PrefetchScalarGridSpec(
            num_scalar_prefetch=0,
            grid=(n_pad // rt,),
            in_specs=[
                pl.BlockSpec((rt, f_pad), lambda i: (i, 0)),
                pl.BlockSpec((f_pad, h_pad), lambda i: (0, 0)),
                pl.BlockSpec((f_pad, h_pad), lambda i: (0, 0)),
                pl.BlockSpec((1, h_pad), lambda i: (0, 0)),
            ],
            out_specs=(pl.BlockSpec((rt, h_pad), lambda i: (i, 0)),
                       pl.BlockSpec((rt, h_pad), lambda i: (i, 0))),
        ),
        compiler_params=_cparams(("parallel",)),
    )(x, w_neigh, w_self, bias)


# ----------------------------------------------------------------------------
# Kernel 2: tiled SAGE aggregation  out = relu?( XWs + (1/deg) * (A @ XWn) )
#   grid = (row_tiles, k_tiles), (tm, h_pad) f32 accumulator over k.
# ----------------------------------------------------------------------------
def _sage_agg_kernel(a_ref, xwn_ref, xws_ref, invd_ref, o_ref, acc_ref,
                     *, apply_relu):
    k = pl.program_id(1)

    @pl.when(k == 0)
    def _():
        acc_ref[...] = jnp.zeros_like(acc_ref)

    acc_ref[...] += jnp.dot(a_ref[...], xwn_ref[...],
                            preferred_element_type=jnp.float32)

    @pl.when(k == pl.num_programs(1) - 1)
    def _():
        out = xws_ref[...] + invd_ref[...] * acc_ref[...]
        if apply_relu:
            out = jnp.maximum(out, 0.0)
        o_ref[...] = out.astype(o_ref.dtype)


def sage_aggregate(a, xwn, xws, inv_deg, *, apply_relu, out_dtype):
    n_pad = a.shape[0]
    h_pad = xwn.shape[1]
    tm, tk = _row_tile(n_pad), _k_tile(n_pad)
    kernel = functools.partial(_sage_agg_kernel, apply_relu=apply_relu)
    return pl.pallas_call(
        kernel,
        out_shape=jax.ShapeDtypeStruct((n_pad, h_pad), out_dtype),
        grid_spec=pltpu.PrefetchScalarGridSpec(
            num_scalar_prefetch=0,
            grid=(n_pad // tm, n_pad // tk),
            in_specs=[
                pl.BlockSpec((tm, tk), lambda i, k: (i, k)),      # A (0/1 counts, bf16)
                pl.BlockSpec((tk, h_pad), lambda i, k: (k, 0)),   # X @ W_neigh
                pl.BlockSpec((tm, h_pad), lambda i, k: (i, 0)),   # X @ W_self + b
                pl.BlockSpec((tm, 1), lambda i, k: (i, 0)),       # 1/deg (f32)
            ],
            out_specs=pl.BlockSpec((tm, h_pad), lambda i, k: (i, 0)),
            scratch_shapes=[pltpu.VMEM((tm, h_pad), jnp.float32)],
        ),
        compiler_params=_cparams(("parallel", "arbitrary")),
    )(a, xwn, xws, inv_deg)


# ----------------------------------------------------------------------------
# Kernel 3: encoder layer 2 fused with dGen
#   enc = XWs + (1/deg) * (A @ XWn) ;  deg = relu(enc @ Wd + bd)  (lane-padded to 128)
# ----------------------------------------------------------------------------
def _sage_agg_dgen_kernel(a_ref, xwn_ref, xws_ref, invd_ref, wd_ref, bd_ref,
                          enc_ref, deg_ref, acc_ref):
    k = pl.program_id(1)

    @pl.when(k == 0)
    def _():
        acc_ref[...] = jnp.zeros_like(acc_ref)

    acc_ref[...] += jnp.dot(a_ref[...], xwn_ref[...],
                            preferred_element_type=jnp.float32)

    @pl.when(k == pl.num_programs(1) - 1)
    def _():
        enc = xws_ref[...] + invd_ref[...] * acc_ref[...]
        enc_ref[...] = enc.astype(enc_ref.dtype)
        deg = jnp.dot(enc.astype(jnp.bfloat16), wd_ref[...],
                      preferred_element_type=jnp.float32) + bd_ref[...]
        deg_ref[...] = jnp.maximum(deg, 0.0)


def sage_aggregate_dgen(a, xwn, xws, inv_deg, w_d, b_d):
    n_pad = a.shape[0]
    l_pad = xwn.shape[1]
    d_pad = w_d.shape[1]
    tm, tk = _row_tile(n_pad), _k_tile(n_pad)
    return pl.pallas_call(
        _sage_agg_dgen_kernel,
        out_shape=(jax.ShapeDtypeStruct((n_pad, l_pad), jnp.bfloat16),
                   jax.ShapeDtypeStruct((n_pad, d_pad), jnp.float32)),
        grid_spec=pltpu.PrefetchScalarGridSpec(
            num_scalar_prefetch=0,
            grid=(n_pad // tm, n_pad // tk),
            in_specs=[
                pl.BlockSpec((tm, tk), lambda i, k: (i, k)),
                pl.BlockSpec((tk, l_pad), lambda i, k: (k, 0)),
                pl.BlockSpec((tm, l_pad), lambda i, k: (i, 0)),
                pl.BlockSpec((tm, 1), lambda i, k: (i, 0)),
                pl.BlockSpec((l_pad, d_pad), lambda i, k: (0, 0)),
                pl.BlockSpec((1, d_pad), lambda i, k: (0, 0)),
            ],
            out_specs=(pl.BlockSpec((tm, l_pad), lambda i, k: (i, 0)),
                       pl.BlockSpec((tm, d_pad), lambda i, k: (i, 0))),
            scratch_shapes=[pltpu.VMEM((tm, l_pad), jnp.float32)],
        ),
        compiler_params=_cparams(("parallel", "arbitrary")),
    )(a, xwn, xws, inv_deg, w_d, b_d)


# ----------------------------------------------------------------------------
# Kernel 4: fGen fused MLP, row- and column-tiled
#   (x + noise) -> relu fc1 -> relu fc2 (cached in VMEM) -> tanh fc_flat (col-tiled)
#   F.dropout(training=False) is the identity in eval mode.
# ----------------------------------------------------------------------------
def _fgen_kernel(x_ref, noise_ref, w1_ref, b1_ref, w2_ref, b2_ref,
                 w3_ref, b3_ref, o_ref, h2_ref):
    c = pl.program_id(1)

    @pl.when(c == 0)
    def _():
        x = (x_ref[...].astype(jnp.float32) + noise_ref[...]).astype(jnp.bfloat16)
        h1 = jnp.maximum(
            jnp.dot(x, w1_ref[...], preferred_element_type=jnp.float32)
            + b1_ref[...], 0.0)
        h2 = jnp.maximum(
            jnp.dot(h1.astype(jnp.bfloat16), w2_ref[...],
                    preferred_element_type=jnp.float32) + b2_ref[...], 0.0)
        h2_ref[...] = h2.astype(h2_ref.dtype)

    o_ref[...] = jnp.tanh(
        jnp.dot(h2_ref[...], w3_ref[...], preferred_element_type=jnp.float32)
        + b3_ref[...]).astype(o_ref.dtype)


def fgen(x, noise, w1, b1, w2, b2, w3, b3):
    n_pad, l_pad = x.shape
    hid1, hid2 = w1.shape[1], w2.shape[1]
    out_pad = w3.shape[1]
    rt = _row_tile(n_pad)
    ct = _col_tile(out_pad)
    return pl.pallas_call(
        _fgen_kernel,
        out_shape=jax.ShapeDtypeStruct((n_pad, out_pad), jnp.bfloat16),
        grid_spec=pltpu.PrefetchScalarGridSpec(
            num_scalar_prefetch=0,
            grid=(n_pad // rt, out_pad // ct),
            in_specs=[
                pl.BlockSpec((rt, l_pad), lambda i, c: (i, 0)),
                pl.BlockSpec((rt, l_pad), lambda i, c: (i, 0)),
                pl.BlockSpec((l_pad, hid1), lambda i, c: (0, 0)),
                pl.BlockSpec((1, hid1), lambda i, c: (0, 0)),
                pl.BlockSpec((hid1, hid2), lambda i, c: (0, 0)),
                pl.BlockSpec((1, hid2), lambda i, c: (0, 0)),
                pl.BlockSpec((hid2, ct), lambda i, c: (0, c)),    # fc_flat weight, col-tiled
                pl.BlockSpec((1, ct), lambda i, c: (0, c)),
            ],
            out_specs=pl.BlockSpec((rt, ct), lambda i, c: (i, c)),
            scratch_shapes=[pltpu.VMEM((rt, hid2), jnp.bfloat16)],  # cached fc2 activation
        ),
        compiler_params=_cparams(("parallel", "arbitrary")),
    )(x, noise, w1, b1, w2, b2, w3, b3)


# ----------------------------------------------------------------------------
# GraphSAGE (2 layers) from the kernels above
# ----------------------------------------------------------------------------
def graphsage_forward(x_pad, a_pad, inv_deg, params):
    xwn1, xws1 = linear_pair(x_pad, params["w1_neigh"], params["w1_self"], params["b1"])
    h1 = sage_aggregate(a_pad, xwn1, xws1, inv_deg,
                        apply_relu=True, out_dtype=jnp.bfloat16)
    xwn2, xws2 = linear_pair(h1, params["w2_neigh"], params["w2_self"], params["b2"])
    logits = sage_aggregate(a_pad, xwn2, xws2, inv_deg,
                            apply_relu=False, out_dtype=jnp.float32)
    return h1, logits


# ----------------------------------------------------------------------------
# Host-side glue: params, adjacency, graph mending
# ----------------------------------------------------------------------------
def _linear_params(key, fan_in, fan_out):
    kw, kb = jax.random.split(key)
    bound = 1.0 / np.sqrt(fan_in)
    w = jax.random.uniform(kw, (fan_in, fan_out), jnp.float32, -bound, bound)
    b = jax.random.uniform(kb, (1, fan_out), jnp.float32, -bound, bound)
    return w, b


def _init_sage(keys, in_dim, hid_dim, out_dim, in_pad, hid_pad, out_pad):
    w1s, _ = _linear_params(keys[0], in_dim, hid_dim)
    w1n, b1 = _linear_params(keys[1], in_dim, hid_dim)
    w2s, _ = _linear_params(keys[2], hid_dim, out_dim)
    w2n, b2 = _linear_params(keys[3], hid_dim, out_dim)
    return dict(
        w1_self=_pad2(w1s, in_pad, hid_pad, jnp.bfloat16),
        w1_neigh=_pad2(w1n, in_pad, hid_pad, jnp.bfloat16),
        b1=_pad2(b1, 1, hid_pad, jnp.float32),
        w2_self=_pad2(w2s, hid_pad, out_pad, jnp.bfloat16),
        w2_neigh=_pad2(w2n, hid_pad, out_pad, jnp.bfloat16),
        b2=_pad2(b2, 1, out_pad, jnp.float32),
    )


def build_adj(edge_index, n_pad):
    """Dense 0/1(count) adjacency (bf16, exact) + f32 1/deg column for mean agg."""
    a = np.zeros((n_pad, n_pad), dtype=np.float32)
    src, dst = np.asarray(edge_index)
    np.add.at(a, (dst.astype(np.int64), src.astype(np.int64)), 1.0)
    deg = a.sum(axis=1, keepdims=True)
    inv = (1.0 / np.maximum(deg, 1.0)).astype(np.float32)
    return jnp.asarray(a, jnp.bfloat16), jnp.asarray(inv, jnp.float32)


def mend(x_np, edge_index_np, y_np, pred_degree_np, pred_neig_feat_np, max_pred):
    """Mirror of NeighGen.mend.
    TODO(synk): data-dependent output shapes have no static-shape Pallas
    equivalent; done on host with numpy."""
    n = x_np.shape[0]
    ptr = n
    remain_feat, remain_edges = [], []
    pred_degree_int = pred_degree_np.astype(np.int32)  # trunc-cast like torch._cast_Int
    for i in range(n):
        for j in range(min(max_pred, int(pred_degree_int[i]))):
            remain_feat.append(pred_neig_feat_np[i, j])
            remain_edges.append(np.array([[i], [ptr]], dtype=edge_index_np.dtype))
            ptr += 1
    if pred_degree_int.sum() > 0:
        mend_x = np.vstack([x_np, np.vstack(remain_feat)])
        mend_edge_index = np.hstack([edge_index_np] + remain_edges)
        mend_y = np.concatenate([y_np, np.zeros(ptr - n, dtype=y_np.dtype)])
    else:
        mend_x = x_np.copy()
        mend_edge_index = edge_index_np.copy()
        mend_y = y_np.copy()
    return mend_x, mend_edge_index, mend_y


# ----------------------------------------------------------------------------
# LocSAGEPlus
# ----------------------------------------------------------------------------
class LocSAGEPlusPallas:
    def __init__(self, input_dim, hid_dim, latent_dim, output_dim, max_pred,
                 dropout, key):
        self.input_dim, self.hid_dim = input_dim, hid_dim
        self.latent_dim, self.output_dim = latent_dim, output_dim
        self.max_pred = max_pred
        self.dropout = dropout  # eval mode -> identity
        self.phase = 0

        self.f_pad = _rup(input_dim, 128)
        self.hid_pad = _rup(hid_dim, 128)
        self.lat_pad = _rup(latent_dim, 128)
        self.out_pad = _rup(output_dim, 128)
        self.fgen_out_pad = _rup(max_pred * input_dim, 128)

        keys = jax.random.split(key, 13)
        # neighGen.encoder: GraphSAGE(input_dim -> hid_dim -> latent_dim)
        self.enc = _init_sage(keys[0:4], input_dim, hid_dim, latent_dim,
                              self.f_pad, self.hid_pad, self.lat_pad)
        # neighGen.dGen (lane-padded to 128; fused into encoder layer 2)
        wd, bd = _linear_params(keys[4], latent_dim, 1)
        self.dgen_w = _pad2(wd, self.lat_pad, 128, jnp.bfloat16)
        self.dgen_b = _pad2(bd, 1, 128, jnp.float32)
        # neighGen.fGen
        w1, b1 = _linear_params(keys[5], latent_dim, 256)
        w2, b2 = _linear_params(keys[6], 256, 2048)
        w3, b3 = _linear_params(keys[7], 2048, max_pred * input_dim)
        self.fgen_w1 = _pad2(w1, self.lat_pad, 256, jnp.bfloat16)
        self.fgen_b1 = _pad2(b1, 1, 256, jnp.float32)
        self.fgen_w2 = _pad2(w2, 256, 2048, jnp.bfloat16)
        self.fgen_b2 = _pad2(b2, 1, 2048, jnp.float32)
        self.fgen_w3 = _pad2(w3, 2048, self.fgen_out_pad, jnp.bfloat16)
        self.fgen_b3 = _pad2(b3, 1, self.fgen_out_pad, jnp.float32)
        # classifier: GraphSAGE(input_dim -> hid_dim -> output_dim)
        self.cls = _init_sage(keys[8:12], input_dim, hid_dim, output_dim,
                              self.f_pad, self.hid_pad, self.out_pad)
        self._noise_key = keys[12]

        self.output_pred_degree = None
        self.output_pred_neig_feat = None
        self.output_mend_graph = None

    def _classify(self, x_np, edge_index, n):
        n_pad = _pad_rows(n)
        x_pad = _pad2(x_np, n_pad, self.f_pad, jnp.bfloat16)
        a_pad, inv_deg = build_adj(edge_index, n_pad)
        emb_pad, logit_pad = graphsage_forward(x_pad, a_pad, inv_deg, self.cls)
        emb = emb_pad[:n, :self.hid_dim].astype(jnp.float32)
        logits = logit_pad[:n, :self.output_dim]
        return emb, logits

    def forward(self, x, edge_index, y):
        x_np = np.asarray(x, np.float32)
        n = x_np.shape[0]

        if self.phase == 0:
            n_pad = _pad_rows(n)
            x_pad = _pad2(x_np, n_pad, self.f_pad, jnp.bfloat16)
            a_pad, inv_deg = build_adj(edge_index, n_pad)

            # ---- NeighGen encoder layer 1 ----
            xwn1, xws1 = linear_pair(x_pad, self.enc["w1_neigh"],
                                     self.enc["w1_self"], self.enc["b1"])
            h1 = sage_aggregate(a_pad, xwn1, xws1, inv_deg,
                                apply_relu=True, out_dtype=jnp.bfloat16)
            # ---- encoder layer 2 fused with dGen ----
            xwn2, xws2 = linear_pair(h1, self.enc["w2_neigh"],
                                     self.enc["w2_self"], self.enc["b2"])
            enc_out, deg = sage_aggregate_dgen(a_pad, xwn2, xws2, inv_deg,
                                               self.dgen_w, self.dgen_b)
            pred_degree = deg[:n, 0]

            # ---- fGen (row/col tiled, cached fc2 activation) ----
            self._noise_key, sub = jax.random.split(self._noise_key)
            noise = jax.random.normal(sub, (n_pad, self.lat_pad), jnp.float32)
            flat = fgen(enc_out, noise, self.fgen_w1, self.fgen_b1,
                        self.fgen_w2, self.fgen_b2, self.fgen_w3, self.fgen_b3)
            pred_neig_feat = (
                flat[:n, :self.max_pred * self.input_dim]
                .astype(jnp.float32)
                .reshape(n, self.max_pred, self.input_dim))

            # ---- mend graph (dynamic shapes -> host) ----
            mend_x, mend_ei, mend_y = mend(
                x_np, np.asarray(edge_index), np.asarray(y),
                np.asarray(pred_degree), np.asarray(pred_neig_feat),
                self.max_pred)

            # ---- classifier on mended graph ----
            mend_embedding, mend_logits = self._classify(
                mend_x, mend_ei, mend_x.shape[0])

            self.output_pred_degree = pred_degree
            self.output_pred_neig_feat = pred_neig_feat
            self.output_mend_graph = (mend_x, mend_ei, mend_y)
            return mend_embedding, mend_logits
        else:
            return self._classify(x_np, edge_index, n)


# ----------------------------------------------------------------------------
# Demo
# ----------------------------------------------------------------------------
if __name__ == "__main__":
    key = jax.random.PRNGKey(0)
    k_x, k_y, k_model = jax.random.split(key, 3)

    # Small synthetic graph: 8 nodes, 16-dim features, bidirectional ring.
    N, INPUT_DIM, HID_DIM, LATENT_DIM = 8, 16, 32, 32
    OUTPUT_DIM, MAX_PRED, DROPOUT = 4, 2, 0.5

    x = jax.random.normal(k_x, (N, INPUT_DIM), jnp.float32)
    src = np.arange(N)
    dst = (src + 1) % N
    edge_index = np.concatenate(
        [np.stack([src, dst]), np.stack([dst, src])], axis=1).astype(np.int64)
    y = np.asarray(jax.random.randint(k_y, (N,), 0, OUTPUT_DIM)).astype(np.int64)

    model = LocSAGEPlusPallas(INPUT_DIM, HID_DIM, LATENT_DIM, OUTPUT_DIM,
                              MAX_PRED, DROPOUT, k_model)
    mend_embedding, mend_logits = model.forward(x, edge_index, y)

    jax.block_until_ready(mend_embedding)
    jax.block_until_ready(mend_logits)

    n_mend = model.output_mend_graph[0].shape[0]
    assert mend_embedding.shape == (n_mend, HID_DIM)
    assert mend_logits.shape == (n_mend, OUTPUT_DIM)
    assert model.output_pred_degree.shape == (N,)
    assert model.output_pred_neig_feat.shape == (N, MAX_PRED, INPUT_DIM)
    assert bool(jnp.all(jnp.isfinite(mend_logits)))
    assert bool(jnp.all(jnp.isfinite(mend_embedding)))
    print("KERNEL_OK")
</pallas_src>

<mosaic_0001>
module attributes {stable_mosaic.version = 11 : i64} {
  func.func @_linear_pair_kernel(%arg0: i32, %arg1: memref<128x128xbf16, #tpu.memory_space<vmem>>, %arg2: memref<128x128xbf16, #tpu.memory_space<vmem>>, %arg3: memref<128x128xbf16, #tpu.memory_space<vmem>>, %arg4: memref<1x128xf32, #tpu.memory_space<vmem>>, %arg5: memref<128x128xbf16, #tpu.memory_space<vmem>>, %arg6: memref<128x128xf32, #tpu.memory_space<vmem>>) attributes {dimension_semantics = [#tpu.dimension_semantics<parallel>], iteration_bounds = array<i64: 1>, scalar_prefetch = 0 : i64, scratch_operands = 0 : i64, tpu.core_type = #tpu.core_type<tc>, window_params = [{transform_indices = @transform_0, window_bounds = array<i64: 128, 128>}, {pipeline_mode = #tpu.pipeline_mode<synchronous>, transform_indices = @transform_1, window_bounds = array<i64: 128, 128>}, {pipeline_mode = #tpu.pipeline_mode<synchronous>, transform_indices = @transform_2, window_bounds = array<i64: 128, 128>}, {pipeline_mode = #tpu.pipeline_mode<synchronous>, transform_indices = @transform_3, window_bounds = array<i64: 1, 128>}, {transform_indices = @transform_4, window_bounds = array<i64: 128, 128>}, {transform_indices = @transform_5, window_bounds = array<i64: 128, 128>}]} {
    %c0 = arith.constant 0 : index
    %c0_0 = arith.constant 0 : index
    %0 = vector.load %arg1[%c0, %c0_0] : memref<128x128xbf16, #tpu.memory_space<vmem>>, vector<128x128xbf16>
    %c0_1 = arith.constant 0 : index
    %c0_2 = arith.constant 0 : index
    %1 = vector.load %arg2[%c0_1, %c0_2] : memref<128x128xbf16, #tpu.memory_space<vmem>>, vector<128x128xbf16>
    %cst = arith.constant dense<0.000000e+00> : vector<128x128xf32>
    %2 = tpu.matmul %0, %1, %cst {dimension_numbers = #tpu.dot_dimension_numbers<[1], [0], [0], [1], [0, 0, 1, 1], [], []>} : vector<128x128xbf16>, vector<128x128xbf16>, vector<128x128xf32> -> vector<128x128xf32>
    %3 = arith.truncf %2 : vector<128x128xf32> to vector<128x128xbf16>
    %c0_3 = arith.constant 0 : index
    %c0_4 = arith.constant 0 : index
    %4 = vector.load %arg5[%c0_3, %c0_4] : memref<128x128xbf16, #tpu.memory_space<vmem>>, vector<128x128xbf16>
    tpu.vector_store %arg5[%c0_3, %c0_4], %3 {strides = array<i32>} : memref<128x128xbf16, #tpu.memory_space<vmem>>, vector<128x128xbf16>,
    %c0_5 = arith.constant 0 : index
    %c0_6 = arith.constant 0 : index
    %5 = vector.load %arg3[%c0_5, %c0_6] : memref<128x128xbf16, #tpu.memory_space<vmem>>, vector<128x128xbf16>
    %cst_7 = arith.constant dense<0.000000e+00> : vector<128x128xf32>
    %6 = tpu.matmul %0, %5, %cst_7 {dimension_numbers = #tpu.dot_dimension_numbers<[1], [0], [0], [1], [0, 0, 1, 1], [], []>} : vector<128x128xbf16>, vector<128x128xbf16>, vector<128x128xf32> -> vector<128x128xf32>
    %c0_8 = arith.constant 0 : index
    %c0_9 = arith.constant 0 : index
    %7 = vector.load %arg4[%c0_8, %c0_9] : memref<1x128xf32, #tpu.memory_space<vmem>>, vector<1x128xf32>
    %8 = vector.broadcast %7 : vector<1x128xf32> to vector<128x128xf32>
    %9 = arith.addf %6, %8 : vector<128x128xf32>
    %c0_10 = arith.constant 0 : index
    %c0_11 = arith.constant 0 : index
    %10 = vector.load %arg6[%c0_10, %c0_11] : memref<128x128xf32, #tpu.memory_space<vmem>>, vector<128x128xf32>
    tpu.vector_store %arg6[%c0_10, %c0_11], %9 {strides = array<i32>} : memref<128x128xf32, #tpu.memory_space<vmem>>, vector<128x128xf32>,
    return
  }
  func.func @transform_0(%arg0: i32) -> (i32, i32) {
    %c0_i32 = arith.constant 0 : i32
    %c0_i32_0 = arith.constant 0 : i32
    return %arg0, %c0_i32 : i32, i32
  }
  func.func @transform_1(%arg0: i32) -> (i32, i32) {
    %c0_i32 = arith.constant 0 : i32
    %c0_i32_0 = arith.constant 0 : i32
    %c0_i32_1 = arith.constant 0 : i32
    return %c0_i32, %c0_i32_0 : i32, i32
  }
  func.func @transform_2(%arg0: i32) -> (i32, i32) {
    %c0_i32 = arith.constant 0 : i32
    %c0_i32_0 = arith.constant 0 : i32
    %c0_i32_1 = arith.constant 0 : i32
    return %c0_i32, %c0_i32_0 : i32, i32
  }
  func.func @transform_3(%arg0: i32) -> (i32, i32) {
    %c0_i32 = arith.constant 0 : i32
    %c0_i32_0 = arith.constant 0 : i32
    %c0_i32_1 = arith.constant 0 : i32
    return %c0_i32, %c0_i32_0 : i32, i32
  }
  func.func @transform_4(%arg0: i32) -> (i32, i32) {
    %c0_i32 = arith.constant 0 : i32
    %c0_i32_0 = arith.constant 0 : i32
    return %arg0, %c0_i32 : i32, i32
  }
  func.func @transform_5(%arg0: i32) -> (i32, i32) {
    %c0_i32 = arith.constant 0 : i32
    %c0_i32_0 = arith.constant 0 : i32
    return %arg0, %c0_i32 : i32, i32
  }
}

</mosaic_0001>

<bundles_post_ra>
// kernel: tpu_custom_call.1
= control target key start
LH: loop header
LB: loop body
LE: loop exit
PB: predicated region body
PF: predicated region fallthrough
CT: control target
= control target key end

     0   :  { %11 = vsyncpa [#allocation3], 0  ;;  %s856_s0 = inlined_call_operand.hbm [shape: bf16[128,128], index: 0, kind: input, shape index: {}]   ;;  %s857_s1 = inlined_call_operand.hbm [shape: bf16[128,128], index: 1, kind: input, shape index: {}]   ;;  %s858_s2 = inlined_call_operand.hbm [shape: bf16[128,128], index: 2, kind: input, shape index: {}]   ;;  %s859_s3 = inlined_call_operand.vmem [shape: f32[1,128], index: 3, kind: input, shape index: {}]   ;;  %s860_s4 = inlined_call_operand.hbm [shape: bf16[128,128], index: 4, kind: output, shape index: {0}]   ;;  %s861_s5 = inlined_call_operand.hbm [shape: f32[128,128], index: 5, kind: output, shape index: {1}]  }
   0x1   :  { %12 = vsyncpa [#allocation6], 0 }
   0x2   :  { %13 = vsyncpa [#allocation4], 0 }
   0x3   :  { %14 = vsyncpa [#allocation10], 0  ;;  %s32_s20 = sshll.u32 %s857_s1, 4  ;;  %s769_s21 = smov [#allocation5]   ;;  %s33_s20 = int_to_ptr.hbm [resolvable:$true] %s32_s20 }
   0x4   :  { %s34_s22 = sshll.u32 %s769_s21, 4  ;;  %s19_s25 = sshll.u32 %s856_s0, 4  ;;  %s35_s22 = int_to_ptr.vmem [resolvable:$true] %s34_s22  ;;  %s20_s25 = int_to_ptr.hbm [resolvable:$true] %s19_s25 }
   0x5   :  { %s770_s26 = smov 64   ;;  %s771_s27 = smov 4  }
   0x6   :  { %40 = dma.hbm_to_vmem [thread:$0]  %s33_s20, 1024, %s35_s22, [#allocation6], %s770_s26, %s770_s26, %s771_s27  }
   0x7   :  { %s772_s28 = smov [#allocation2]   ;;  %s45_s1 = sshll.u32 %s858_s2, 4  ;;  %s46_s1 = int_to_ptr.hbm [resolvable:$true] %s45_s1 }
   0x8   :  { %s21_s29 = sshll.u32 %s772_s28, 4  ;;  %s773_s0 = smov [#allocation7]   ;;  %s22_s29 = int_to_ptr.vmem [resolvable:$true] %s21_s29 }
   0x9   :  { %27 = dma.hbm_to_vmem [thread:$0]  %s20_s25, 1024, %s22_s29, [#allocation3], %s770_s26, %s770_s26, %s771_s27  }
   0xa   :  { %s47_s7 = sshll.u32 %s773_s0, 4  ;;  %s48_s7 = int_to_ptr.vmem [resolvable:$true] %s47_s7 }
   0xb   :  { %53 = dma.hbm_to_vmem [thread:$0]  %s46_s1, 1024, %s48_s7, [#allocation6], %s770_s26, %s770_s26, %s771_s27  }
   0xc   :  { %761 = dma.done.wait [#allocation3], 1024  }
   0xd   :  { %762 = vsyncadd [#allocation3], 4294966272 }
   0xe   :  { %763 = dma.done.wait [#allocation6], 2048  }
   0xf   :  { %764 = vsyncadd [#allocation6], 4294965248  ;;  %v559_v0 = vld [vmem:[#allocation5 + $0x38] sm:$0xff]  ;;  %v558_v2 = vld [vmem:[#allocation5 + $0x30] sm:$0xff]  ;;  %s416_s12 = sshll.u32 %s860_s4, 4  ;;  %s775_s13 = smov [#allocation9]   ;;  %s417_s12 = int_to_ptr.hbm [resolvable:$true] %s416_s12 }
  0x10   :  { %v567_v1 = vld [vmem:[#allocation7 + $0x38] sm:$0xff]  ;;  %196 = vmatpush.bf16.msra.mxu0 %v559_v0  ;;  %615 = vmatpush.bf16.msra.mxu2 %v559_v0  ;;  %v566_v3 = vld [vmem:[#allocation7 + $0x30] sm:$0xff]  ;;  %v557_v4 = vld [vmem:[#allocation5 + $0x28] sm:$0xff]  ;;  %s427_s14 = sshll.u32 %s775_s13, 4  ;;  %s429_s17 = sshll.u32 %s861_s5, 4  ;;  %s428_s14 = int_to_ptr.vmem [resolvable:$true] %s427_s14  ;;  %s430_s17 = int_to_ptr.hbm [resolvable:$true] %s429_s17 }
  0x11   :  { %345 = vmatpush.bf16.msra.mxu1 %v567_v1  ;;  %623 = vmatpush.bf16.msra.mxu3 %v567_v1  ;;  %v565_v5 = vld [vmem:[#allocation7 + $0x28] sm:$0xff]  ;;  %v556_v6 = vld [vmem:[#allocation5 + $0x20] sm:$0xff]  ;;  %v555_v8 = vld [vmem:[#allocation5 + $0x18] sm:$0xff]  ;;  %s776_s4 = smov 128   ;;  %s777_s18 = smov 8  }
  0x12   :  { %v564_v7 = vld [vmem:[#allocation7 + $0x20] sm:$0xff]  ;;  %v563_v9 = vld [vmem:[#allocation7 + $0x18] sm:$0xff]  ;;  %v554_v10 = vld [vmem:[#allocation5 + $0x10] sm:$0xff] }
  0x13   :  { %v562_v11 = vld [vmem:[#allocation7 + $0x10] sm:$0xff]  ;;  %v553_v12 = vld [vmem:[#allocation5 + $0x8] sm:$0xff]  ;;  %v552_v14 = vld [vmem:[#allocation5] sm:$0xff] }
  0x14   :  { %197 = vmatpush.bf16.msra.mxu0 %v558_v2  ;;  %616 = vmatpush.bf16.msra.mxu2 %v558_v2  ;;  %v561_v13 = vld [vmem:[#allocation7 + $0x8] sm:$0xff]  ;;  %v560_v15 = vld [vmem:[#allocation7] sm:$0xff]  ;;  %v546_v20 = vld [vmem:[#allocation2 + $0x10] sm:$0xff] }
  0x15   :  { %346 = vmatpush.bf16.msra.mxu1 %v566_v3  ;;  %624 = vmatpush.bf16.msra.mxu3 %v566_v3  ;;  %v544_v16 = vld [vmem:[#allocation2] sm:$0xff]  ;;  %v545_v18 = vld [vmem:[#allocation2 + $0x8] sm:$0xff]  ;;  %v550_v21 = vld [vmem:[#allocation2 + $0x30] sm:$0xff] }
  0x16   :  { %v548_v17 = vld [vmem:[#allocation2 + $0x20] sm:$0xff]  ;;  %v549_v19 = vld [vmem:[#allocation2 + $0x28] sm:$0xff]  ;;  %v547_v22 = vld [vmem:[#allocation2 + $0x18] sm:$0xff] }
  0x17   :  { %v551_v23 = vld [vmem:[#allocation2 + $0x38] sm:$0xff]  ;;  %v829_v24 = vld [vmem:[%s859_s3] ss:$0 sm:$0xff]  ;;  %s774_s3 = smov [#allocation8]  }
  0x18   :  { %198 = vmatpush.bf16.msra.mxu0 %v557_v4  ;;  %617 = vmatpush.bf16.msra.mxu2 %v557_v4  ;;  %s414_s9 = sshll.u32 %s774_s3, 4  ;;  %s415_s9 = int_to_ptr.vmem [resolvable:$true] %s414_s9 }
  0x19   :  { %347 = vmatpush.bf16.msra.mxu1 %v565_v5  ;;  %625 = vmatpush.bf16.msra.mxu3 %v565_v5 }
  0x1c   :  { %199 = vmatpush.bf16.msra.mxu0 %v556_v6  ;;  %618 = vmatpush.bf16.msra.mxu2 %v556_v6 }
  0x1d   :  { %348 = vmatpush.bf16.msra.mxu1 %v564_v7  ;;  %626 = vmatpush.bf16.msra.mxu3 %v564_v7 }
  0x20   :  { %200 = vmatpush.bf16.msra.mxu0 %v555_v8  ;;  %619 = vmatpush.bf16.msra.mxu2 %v555_v8 }
  0x21   :  { %349 = vmatpush.bf16.msra.mxu1 %v563_v9  ;;  %627 = vmatpush.bf16.msra.mxu3 %v563_v9 }
  0x24   :  { %201 = vmatpush.bf16.msra.mxu0 %v554_v10  ;;  %620 = vmatpush.bf16.msra.mxu2 %v554_v10 }
  0x25   :  { %350 = vmatpush.bf16.msra.mxu1 %v562_v11  ;;  %628 = vmatpush.bf16.msra.mxu3 %v562_v11 }
  0x28   :  { %202 = vmatpush.bf16.msra.mxu0 %v553_v12  ;;  %621 = vmatpush.bf16.msra.mxu2 %v553_v12 }
  0x29   :  { %351 = vmatpush.bf16.msra.mxu1 %v561_v13  ;;  %629 = vmatpush.bf16.msra.mxu3 %v561_v13 }
  0x2c   :  { %203 = vmatpush.bf16.msra.mxu0 %v552_v14  ;;  %622 = vmatpush.bf16.msra.mxu2 %v552_v14 }
  0x2d   :  { %352 = vmatpush.bf16.msra.mxu1 %v560_v15  ;;  %630 = vmatpush.bf16.msra.mxu3 %v560_v15 }
  0x2f   :  { %204 = vmatmul.bf16.vlgmr.msra.gmra.mxu0 %v544_v16  ;;  %224 = vmatmul.bf16.vlgmr.msra.gmra.mxu2 %v548_v17 }
  0x30   :  { %353 = vmatmul.bf16.vlgmr.msra.gmra.mxu1 %v544_v16  ;;  %373 = vmatmul.bf16.vlgmr.msra.gmra.mxu3 %v548_v17 }
  0x3f   :  { %209 = vmatmul.bf16.gmra.mxu0 %v545_v18  ;;  %229 = vmatmul.bf16.gmra.mxu2 %v549_v19 }
  0x40   :  { %358 = vmatmul.bf16.gmra.mxu1 %v545_v18  ;;  %378 = vmatmul.bf16.gmra.mxu3 %v549_v19 }
  0x4f   :  { %214 = vmatmul.bf16.gmra.mxu0 %v546_v20  ;;  %234 = vmatmul.bf16.gmra.mxu2 %v550_v21 }
  0x50   :  { %363 = vmatmul.bf16.gmra.mxu1 %v546_v20  ;;  %383 = vmatmul.bf16.gmra.mxu3 %v550_v21 }
  0x5f   :  { %219 = vmatmul.bf16.gmra.mxu0 %v547_v22  ;;  %239 = vmatmul.bf16.gmra.mxu2 %v551_v23 }
  0x60   :  { %368 = vmatmul.bf16.gmra.mxu1 %v547_v22  ;;  %388 = vmatmul.bf16.gmra.mxu3 %v551_v23 }
  0xac   :  { %v205_v25 = vpop.f32.mrf.mxu0 }
  0xad   :  { %v354_v26 = vpop.f32.mrf.mxu1 }
  0xae   :  { %v355_v27 = vadd.f32 %v829_v24, %v354_v26 }
  0xb0   :  { %394 = vst [vmem:[#allocation9] sm:$0xff] %v355_v27 }
  0xb2   :  { %v225_v28 = vpop.f32.mrf.mxu2 }
  0xb3   :  { %v374_v29 = vpop.f32.mrf.mxu3 }
  0xb4   :  { %v375_v30 = vadd.f32 %v829_v24, %v374_v29  ;;  %v207_v31 = vpop.f32.mrf.mxu0 }
  0xb5   :  { %v571_v32 = vpack.c.bf16 %v207_v31, %v205_v25  ;;  %v356_v33 = vpop.f32.mrf.mxu1 }
  0xb6   :  { %402 = vst [vmem:[#allocation9 + $0x40] sm:$0xff] %v375_v30  ;;  %v357_v34 = vadd.f32 %v829_v24, %v356_v33 }
  0xb7   :  { %572 = vst [vmem:[#allocation8] sm:$0xff] %v571_v32  }
  0xb8   :  { %395 = vst [vmem:[#allocation9 + $0x8] sm:$0xff] %v357_v34 }
  0xba   :  { %v227_v35 = vpop.f32.mrf.mxu2 }
  0xbb   :  { %v591_v36 = vpack.c.bf16 %v227_v35, %v225_v28  ;;  %v376_v37 = vpop.f32.mrf.mxu3 }
  0xbc   :  { %v377_v38 = vadd.f32 %v829_v24, %v376_v37  ;;  %v210_v39 = vpop.f32.mrf.mxu0 }
  0xbd   :  { %611 = vst [vmem:[#allocation8 + $0x20] sm:$0xff] %v591_v36   ;;  %v359_v40 = vpop.f32.mrf.mxu1 }
  0xbe   :  { %403 = vst [vmem:[#allocation9 + $0x48] sm:$0xff] %v377_v38  ;;  %v360_v41 = vadd.f32 %v829_v24, %v359_v40 }
  0xc0   :  { %396 = vst [vmem:[#allocation9 + $0x10] sm:$0xff] %v360_v41 }
  0xc2   :  { %v230_v42 = vpop.f32.mrf.mxu2 }
  0xc3   :  { %v379_v43 = vpop.f32.mrf.mxu3 }
  0xc4   :  { %v380_v44 = vadd.f32 %v829_v24, %v379_v43  ;;  %v212_v45 = vpop.f32.mrf.mxu0 }
  0xc5   :  { %v576_v46 = vpack.c.bf16 %v212_v45, %v210_v39  ;;  %v361_v47 = vpop.f32.mrf.mxu1 }
  0xc6   :  { %404 = vst [vmem:[#allocation9 + $0x50] sm:$0xff] %v380_v44  ;;  %v362_v48 = vadd.f32 %v829_v24, %v361_v47 }
  0xc7   :  { %608 = vst [vmem:[#allocation8 + $0x8] sm:$0xff] %v576_v46  }
  0xc8   :  { %397 = vst [vmem:[#allocation9 + $0x18] sm:$0xff] %v362_v48 }
  0xca   :  { %v232_v49 = vpop.f32.mrf.mxu2 }
  0xcb   :  { %v596_v50 = vpack.c.bf16 %v232_v49, %v230_v42  ;;  %v381_v51 = vpop.f32.mrf.mxu3 }
  0xcc   :  { %v382_v52 = vadd.f32 %v829_v24, %v381_v51  ;;  %v215_v53 = vpop.f32.mrf.mxu0 }
  0xcd   :  { %612 = vst [vmem:[#allocation8 + $0x28] sm:$0xff] %v596_v50   ;;  %v364_v54 = vpop.f32.mrf.mxu1 }
  0xce   :  { %405 = vst [vmem:[#allocation9 + $0x58] sm:$0xff] %v382_v52  ;;  %v365_v55 = vadd.f32 %v829_v24, %v364_v54 }
  0xd0   :  { %398 = vst [vmem:[#allocation9 + $0x20] sm:$0xff] %v365_v55 }
  0xd2   :  { %v235_v56 = vpop.f32.mrf.mxu2 }
  0xd3   :  { %v384_v57 = vpop.f32.mrf.mxu3 }
  0xd4   :  { %v385_v58 = vadd.f32 %v829_v24, %v384_v57  ;;  %v217_v59 = vpop.f32.mrf.mxu0 }
  0xd5   :  { %v581_v60 = vpack.c.bf16 %v217_v59, %v215_v53  ;;  %v366_v61 = vpop.f32.mrf.mxu1 }
  0xd6   :  { %406 = vst [vmem:[#allocation9 + $0x60] sm:$0xff] %v385_v58  ;;  %v367_v62 = vadd.f32 %v829_v24, %v366_v61 }
  0xd7   :  { %609 = vst [vmem:[#allocation8 + $0x10] sm:$0xff] %v581_v60  }
  0xd8   :  { %399 = vst [vmem:[#allocation9 + $0x28] sm:$0xff] %v367_v62 }
  0xda   :  { %v237_v63 = vpop.f32.mrf.mxu2 }
  0xdb   :  { %v601_v0 = vpack.c.bf16 %v237_v63, %v235_v56  ;;  %v386_v1 = vpop.f32.mrf.mxu3 }
  0xdc   :  { %v387_v2 = vadd.f32 %v829_v24, %v386_v1  ;;  %v220_v3 = vpop.f32.mrf.mxu0 }
  0xdd   :  { %613 = vst [vmem:[#allocation8 + $0x30] sm:$0xff] %v601_v0   ;;  %v369_v4 = vpop.f32.mrf.mxu1 }
  0xde   :  { %407 = vst [vmem:[#allocation9 + $0x68] sm:$0xff] %v387_v2  ;;  %v370_v5 = vadd.f32 %v829_v24, %v369_v4 }
  0xe0   :  { %400 = vst [vmem:[#allocation9 + $0x30] sm:$0xff] %v370_v5 }
  0xe2   :  { %v240_v6 = vpop.f32.mrf.mxu2 }
  0xe3   :  { %v389_v7 = vpop.f32.mrf.mxu3 }
  0xe4   :  { %v390_v8 = vadd.f32 %v829_v24, %v389_v7  ;;  %v222_v9 = vpop.f32.mrf.mxu0 }
  0xe5   :  { %v586_v10 = vpack.c.bf16 %v222_v9, %v220_v3  ;;  %v371_v11 = vpop.f32.mrf.mxu1 }
  0xe6   :  { %408 = vst [vmem:[#allocation9 + $0x70] sm:$0xff] %v390_v8  ;;  %v372_v12 = vadd.f32 %v829_v24, %v371_v11 }
  0xe7   :  { %610 = vst [vmem:[#allocation8 + $0x18] sm:$0xff] %v586_v10  }
  0xe8   :  { %401 = vst [vmem:[#allocation9 + $0x38] sm:$0xff] %v372_v12 }
  0xea   :  { %v242_v13 = vpop.f32.mrf.mxu2 }
  0xeb   :  { %v606_v14 = vpack.c.bf16 %v242_v13, %v240_v6  ;;  %v391_v15 = vpop.f32.mrf.mxu3 }
  0xec   :  { %v392_v16 = vadd.f32 %v829_v24, %v391_v15 }
  0xed   :  { %614 = vst [vmem:[#allocation8 + $0x38] sm:$0xff] %v606_v14  }
  0xee   :  { %409 = vst [vmem:[#allocation9 + $0x78] sm:$0xff] %v392_v16  ;;  %422 = dma.vmem_to_hbm [thread:$0]  %s415_s9, 1024, %s417_s12, [#allocation4], %s770_s26, %s770_s26, %s771_s27  }
  0xef   :  { %435 = dma.vmem_to_hbm [thread:$0]  %s428_s14, 2048, %s430_s17, [#allocation10], %s776_s4, %s776_s4, %s777_s18  }
  0xf0   :  { %765 = dma.done.wait [#allocation4], 1024  }
  0xf1   :  { %766 = vsyncadd [#allocation4], 4294966272 }
  0xf2   :  { %767 = dma.done.wait [#allocation10], 2048  }
  0xf3   :  { %768 = vsyncadd [#allocation10], 4294965248 }
  0xf4   :  { %444 = vsyncpa [#allocation3], 1 }
  0xf5   :  { %445 = vsyncpa [#allocation6], 1 }
  0xf6   :  { %446 = vsyncpa [#allocation4], 1 }
  0xf7   :  { %447 = vsyncpa [#allocation10], 1 }

</bundles_post_ra>
